<compile_context>
chip_gen: v5e
topology: v5e:2x2
jax: 0.10.0
libtpu: 0.0.40
codegen_flags: <defaults>
</compile_context>

<pallas_src>
import jax
import jax.numpy as jnp
from jax.experimental import pallas as pl
from jax.experimental.pallas import tpu as pltpu


def _make_kernel(quantiles, true_b):
    quantiles = tuple(float(q) for q in quantiles)
    inv_b = 1.0 / float(true_b)  # divide by the TRUE batch size, not padded

    def kernel(preds_ref, target_ref, out_ref, acc_ref):
        # --- init accumulator on the first batch tile ---
        @pl.when(pl.program_id(0) == 0)
        def _():
            acc_ref[...] = jnp.zeros_like(acc_ref)

        # Upcast inside the kernel (inputs stay in native dtype in HBM).
        preds = preds_ref[...].astype(jnp.float32)    # (Q, TB)
        target = target_ref[...].astype(jnp.float32)  # (1, TB)

        # Unrolled per-quantile pinball; q folds into immediate multiplies.
        total = jnp.zeros_like(target)                # (1, TB)
        for i, q in enumerate(quantiles):
            e = target - preds[i:i + 1, :]            # (1, TB), VPU only
            total = total + jnp.maximum((q - 1.0) * e, q * e)

        # Single cross-lane reduce per tile, accumulated in f32 scratch.
        acc_ref[...] += jnp.sum(total, keepdims=True)  # (1, 1)

        # --- finalize on the last batch tile ---
        @pl.when(pl.program_id(0) == pl.num_programs(0) - 1)
        def _():
            out_ref[...] = acc_ref[...] * inv_b

    return kernel


def quantile_loss(preds: jax.Array, target: jax.Array, quantiles, *, tile_b=2048) -> jax.Array:
    """preds: (B, Q), target: (B,), quantiles: python list/tuple of length Q."""
    B, Q = preds.shape
    assert target.shape[0] == B
    assert Q == len(quantiles)

    # Lane-dense layout plumbing (no f32 copy of preds in HBM).
    preds_t = preds.T                  # (Q, B), native dtype
    target_t = target.reshape(1, B)    # (1, B)

    # Lane-dense tile (multiple of 128); zero-pad the batch tail.
    tb = min(int(tile_b), pl.cdiv(B, 128) * 128)
    b_pad = pl.cdiv(B, tb) * tb
    if b_pad != B:
        # Equal zero padding of preds & target => padded pinball terms are exactly 0.
        preds_t = jnp.pad(preds_t, ((0, 0), (0, b_pad - B)))
        target_t = jnp.pad(target_t, ((0, 0), (0, b_pad - B)))

    grid = (b_pad // tb,)
    kernel = _make_kernel(quantiles, B)

    out = pl.pallas_call(
        kernel,
        out_shape=jax.ShapeDtypeStruct((1, 1), jnp.float32),
        grid_spec=pltpu.PrefetchScalarGridSpec(
            num_scalar_prefetch=0,
            grid=grid,
            in_specs=[
                pl.BlockSpec((Q, tb), lambda i: (0, i)),   # preds  (Q, TB)
                pl.BlockSpec((1, tb), lambda i: (0, i)),   # target (1, TB)
            ],
            out_specs=pl.BlockSpec((1, 1), lambda i: (0, 0)),  # resident scalar block
            scratch_shapes=[pltpu.VMEM((1, 1), jnp.float32)],  # f32 partial-sum accumulator
        ),
        compiler_params=pltpu.CompilerParams(
            dimension_semantics=("arbitrary",),  # reduction over the batch grid axis
        ),
    )(preds_t, target_t)
    return out[0, 0]


def quantile_loss_ref(preds, target, quantiles):
    """Pure-JAX reference mirroring the PyTorch forward."""
    losses = []
    for i, q in enumerate(quantiles):
        errors = target - preds[:, i]
        losses.append(jnp.maximum((q - 1.0) * errors, q * errors)[:, None])
    return jnp.mean(jnp.sum(jnp.concatenate(losses, axis=1), axis=1))


if __name__ == "__main__":
    quantiles = [0.1, 0.5, 0.9]
    B, Q = 8, len(quantiles)

    key = jax.random.PRNGKey(0)
    kp, kt = jax.random.split(key)
    preds = jax.random.normal(kp, (B, Q), dtype=jnp.float32)
    target = jax.random.normal(kt, (B,), dtype=jnp.float32)

    loss = quantile_loss(preds, target, quantiles)
    jax.block_until_ready(loss)
    ref = quantile_loss_ref(preds, target, quantiles)
    assert jnp.allclose(loss, ref, rtol=1e-6, atol=1e-6), (loss, ref)

    # Multi-tile grid + non-multiple-of-tile batch (exercises tail padding + accumulator).
    B2 = 300
    kp2, kt2 = jax.random.split(jax.random.PRNGKey(1))
    preds2 = jax.random.normal(kp2, (B2, Q), dtype=jnp.float32)
    target2 = jax.random.normal(kt2, (B2,), dtype=jnp.float32)
    loss2 = quantile_loss(preds2, target2, quantiles, tile_b=128)
    jax.block_until_ready(loss2)
    ref2 = quantile_loss_ref(preds2, target2, quantiles)
    assert jnp.allclose(loss2, ref2, rtol=1e-5, atol=1e-6), (loss2, ref2)

    print("KERNEL_OK")
</pallas_src>

<mosaic_0001>
module attributes {stable_mosaic.version = 11 : i64} {
  func.func @kernel(%arg0: i32, %arg1: memref<3x128xf32, #tpu.memory_space<vmem>>, %arg2: memref<1x128xf32, #tpu.memory_space<vmem>>, %arg3: memref<1x1xf32, #tpu.memory_space<vmem>>, %arg4: memref<1x1xf32, #tpu.memory_space<vmem>>) attributes {dimension_semantics = [#tpu.dimension_semantics<arbitrary>], iteration_bounds = array<i64: 1>, scalar_prefetch = 0 : i64, scratch_operands = 1 : i64, tpu.core_type = #tpu.core_type<tc>, window_params = [{transform_indices = @transform_0, window_bounds = array<i64: 3, 128>}, {transform_indices = @transform_1, window_bounds = array<i64: 1, 128>}, {pipeline_mode = #tpu.pipeline_mode<synchronous>, transform_indices = @transform_2, window_bounds = array<i64: 1, 1>}]} {
    %c0_i32 = arith.constant 0 : i32
    %0 = arith.cmpi eq, %arg0, %c0_i32 : i32
    %1 = arith.extui %0 : i1 to i32
    %c0_i32_0 = arith.constant 0 : i32
    %2 = arith.cmpi ne, %1, %c0_i32_0 : i32
    scf.if %2 {
      %cst_17 = arith.constant 0.000000e+00 : f32
      %41 = vector.broadcast %cst_17 : f32 to vector<1x1xf32>
      %c0_18 = arith.constant 0 : index
      %c0_19 = arith.constant 0 : index
      %42 = vector.load %arg4[%c0_18, %c0_19] : memref<1x1xf32, #tpu.memory_space<vmem>>, vector<1x1xf32>
      tpu.vector_store %arg4[%c0_18, %c0_19], %41 {strides = array<i32>} : memref<1x1xf32, #tpu.memory_space<vmem>>, vector<1x1xf32>,
    } else {
    }
    %c0 = arith.constant 0 : index
    %c0_1 = arith.constant 0 : index
    %3 = vector.load %arg1[%c0, %c0_1] : memref<3x128xf32, #tpu.memory_space<vmem>>, vector<3x128xf32>
    %c0_2 = arith.constant 0 : index
    %c0_3 = arith.constant 0 : index
    %4 = vector.load %arg2[%c0_2, %c0_3] : memref<1x128xf32, #tpu.memory_space<vmem>>, vector<1x128xf32>
    %cst = arith.constant 0.000000e+00 : f32
    %5 = vector.broadcast %cst : f32 to vector<1x128xf32>
    %6 = vector.extract_strided_slice %3 {offsets = [0, 0], sizes = [1, 128], strides = [1, 1]} : vector<3x128xf32> to vector<1x128xf32>
    %7 = arith.subf %4, %6 : vector<1x128xf32>
    %cst_4 = arith.constant -0.899999976 : f32
    %8 = vector.broadcast %cst_4 : f32 to vector<1x128xf32>
    %9 = arith.mulf %8, %7 : vector<1x128xf32>
    %cst_5 = arith.constant 1.000000e-01 : f32
    %10 = vector.broadcast %cst_5 : f32 to vector<1x128xf32>
    %11 = arith.mulf %10, %7 : vector<1x128xf32>
    %12 = arith.maximumf %9, %11 : vector<1x128xf32>
    %13 = arith.addf %5, %12 : vector<1x128xf32>
    %14 = vector.extract_strided_slice %3 {offsets = [1, 0], sizes = [1, 128], strides = [1, 1]} : vector<3x128xf32> to vector<1x128xf32>
    %15 = arith.subf %4, %14 : vector<1x128xf32>
    %cst_6 = arith.constant -5.000000e-01 : f32
    %16 = vector.broadcast %cst_6 : f32 to vector<1x128xf32>
    %17 = arith.mulf %16, %15 : vector<1x128xf32>
    %cst_7 = arith.constant 5.000000e-01 : f32
    %18 = vector.broadcast %cst_7 : f32 to vector<1x128xf32>
    %19 = arith.mulf %18, %15 : vector<1x128xf32>
    %20 = arith.maximumf %17, %19 : vector<1x128xf32>
    %21 = arith.addf %13, %20 : vector<1x128xf32>
    %22 = vector.extract_strided_slice %3 {offsets = [2, 0], sizes = [1, 128], strides = [1, 1]} : vector<3x128xf32> to vector<1x128xf32>
    %23 = arith.subf %4, %22 : vector<1x128xf32>
    %cst_8 = arith.constant -1.000000e-01 : f32
    %24 = vector.broadcast %cst_8 : f32 to vector<1x128xf32>
    %25 = arith.mulf %24, %23 : vector<1x128xf32>
    %cst_9 = arith.constant 0.899999976 : f32
    %26 = vector.broadcast %cst_9 : f32 to vector<1x128xf32>
    %27 = arith.mulf %26, %23 : vector<1x128xf32>
    %28 = arith.maximumf %25, %27 : vector<1x128xf32>
    %29 = arith.addf %21, %28 : vector<1x128xf32>
    %c0_10 = arith.constant 0 : index
    %c0_11 = arith.constant 0 : index
    %30 = vector.load %arg4[%c0_10, %c0_11] : memref<1x1xf32, #tpu.memory_space<vmem>>, vector<1x1xf32>
    %31 = vector.shape_cast %29 : vector<1x128xf32> to vector<1x1x128xf32>
    %cst_12 = arith.constant dense<0.000000e+00> : vector<1xf32>
    %32 = vector.multi_reduction <add>, %31, %cst_12 [1, 2] : vector<1x1x128xf32> to vector<1xf32>
    %33 = vector.shape_cast %32 : vector<1xf32> to vector<1x1x1xf32>
    %34 = vector.extract %33[0, 0, 0] : f32 from vector<1x1x1xf32>
    %35 = vector.broadcast %34 : f32 to vector<1x1xf32>
    %36 = arith.addf %30, %35 : vector<1x1xf32>
    %c0_13 = arith.constant 0 : index
    %c0_14 = arith.constant 0 : index
    %37 = vector.load %arg4[%c0_13, %c0_14] : memref<1x1xf32, #tpu.memory_space<vmem>>, vector<1x1xf32>
    tpu.vector_store %arg4[%c0_13, %c0_14], %36 {strides = array<i32>} : memref<1x1xf32, #tpu.memory_space<vmem>>, vector<1x1xf32>,
    %c0_i32_15 = arith.constant 0 : i32
    %38 = arith.cmpi eq, %arg0, %c0_i32_15 : i32
    %39 = arith.extui %38 : i1 to i32
    %c0_i32_16 = arith.constant 0 : i32
    %40 = arith.cmpi ne, %39, %c0_i32_16 : i32
    scf.if %40 {
      %c0_17 = arith.constant 0 : index
      %c0_18 = arith.constant 0 : index
      %41 = vector.load %arg4[%c0_17, %c0_18] : memref<1x1xf32, #tpu.memory_space<vmem>>, vector<1x1xf32>
      %cst_19 = arith.constant 1.250000e-01 : f32
      %42 = vector.broadcast %cst_19 : f32 to vector<1x1xf32>
      %43 = arith.mulf %41, %42 : vector<1x1xf32>
      %c0_20 = arith.constant 0 : index
      %c0_21 = arith.constant 0 : index
      %44 = vector.load %arg3[%c0_20, %c0_21] : memref<1x1xf32, #tpu.memory_space<vmem>>, vector<1x1xf32>
      tpu.vector_store %arg3[%c0_20, %c0_21], %43 {strides = array<i32>} : memref<1x1xf32, #tpu.memory_space<vmem>>, vector<1x1xf32>,
    } else {
    }
    return
  }
  func.func @transform_0(%arg0: i32) -> (i32, i32) {
    %c0_i32 = arith.constant 0 : i32
    %c0_i32_0 = arith.constant 0 : i32
    return %c0_i32, %arg0 : i32, i32
  }
  func.func @transform_1(%arg0: i32) -> (i32, i32) {
    %c0_i32 = arith.constant 0 : i32
    %c0_i32_0 = arith.constant 0 : i32
    return %c0_i32, %arg0 : i32, i32
  }
  func.func @transform_2(%arg0: i32) -> (i32, i32) {
    %c0_i32 = arith.constant 0 : i32
    %c0_i32_0 = arith.constant 0 : i32
    %c0_i32_1 = arith.constant 0 : i32
    return %c0_i32, %c0_i32_0 : i32, i32
  }
}

</mosaic_0001>

<bundles_post_ra>
// kernel: tpu_custom_call.1
= control target key start
LH: loop header
LB: loop body
LE: loop exit
PB: predicated region body
PF: predicated region fallthrough
CT: control target
= control target key end

     0   :  { %7 = vsyncpa [#allocation4], 0  ;;  %s227_s0 = inlined_call_operand.hbm [shape: f32[3,128], index: 0, kind: input, shape index: {}]   ;;  %s228_s1 = inlined_call_operand.hbm [shape: f32[1,128], index: 1, kind: input, shape index: {}]   ;;  %s229_s2 = inlined_call_operand.hbm [shape: f32[1,1], index: 2, kind: output, shape index: {}]  }
   0x1   :  { %8 = vsyncpa [#allocation7], 0 }
   0x2   :  { %9 = vsyncpa [#allocation5], 0  ;;  %s15_s11 = sshll.u32 %s227_s0, 4  ;;  %s196_s12 = smov [#allocation3]   ;;  %s16_s11 = int_to_ptr.hbm [resolvable:$true] %s15_s11 }
   0x3   :  { %s17_s13 = sshll.u32 %s196_s12, 4  ;;  %s26_s16 = sshll.u32 %s228_s1, 4  ;;  %s18_s13 = int_to_ptr.vmem [resolvable:$true] %s17_s13  ;;  %s27_s16 = int_to_ptr.hbm [resolvable:$true] %s26_s16 }
   0x4   :  { %20 = dma.hbm_to_vmem [thread:$0]  %s16_s11, 64, %s18_s13, [#allocation4]  }
   0x5   :  { %s197_s17 = smov [#allocation6]  }
   0x6   :  { %s28_s18 = sshll.u32 %s197_s17, 4  ;;  %s29_s18 = int_to_ptr.vmem [resolvable:$true] %s28_s18 }
   0x7   :  { %31 = dma.hbm_to_vmem [thread:$0]  %s27_s16, 16, %s29_s18, [#allocation7]  }
   0x8   :  { %190 = dma.done.wait [#allocation4], 64  }
   0x9   :  { %191 = vsyncadd [#allocation4], 4294967232 }
   0xa   :  { %192 = dma.done.wait [#allocation7], 16  }
   0xb   :  { %193 = vsyncadd [#allocation7], 4294967280  ;;  %v46_v0 = vld [vmem:[#allocation3] sm:$0x7]  ;;  %v47_v1 = vld [vmem:[#allocation6] sm:$0x1] }
   0xc   :  { %54 = vst [vmem:[#allocation1] sm:$0xff] %v46_v0  ;;  %v48_v2 = vsub.f32 %v47_v1, %v46_v0  ;;  %vm73_vm0 = vcmask 1040384   ;;  %vm44_vm1 = vcmask 0   ;;  %v198_v19 = vmov 0.0   ;;  %s199_s1 = smov [#allocation8]   ;;  %s101_s22 = sshll.u32 %s229_s2, 4  ;;  %s102_s22 = int_to_ptr.hbm [resolvable:$true] %s101_s22 }
   0xd   :  { %45 = vst.msk [vmem:[#allocation2] sm:$0x1] %vm44_vm1, %v198_v19  ;;  %s99_s19 = sshll.u32 %s199_s1, 4  ;;  %s100_s19 = int_to_ptr.vmem [resolvable:$true] %s99_s19 }
   0xe   :  { %v49_v5 = vmul.f32 -0.9, %v48_v2  ;;  %v50_v6 = vmul.f32 0.1, %v48_v2 }
  0x10   :  { %v51_v9 = vmax.f32 %v49_v5, %v50_v6 }
  0x13   :  { %v56_v3 = vld [vmem:[#allocation1 + $0x1] ss:$9 sm:$0xff] }
  0x14   :  { %v58_v4 = vsub.f32 %v47_v1, %v56_v3  ;;  %63 = vst [vmem:[#allocation1] sm:$0xff] %v46_v0  ;;  %v72_v27 = vld [vmem:[#allocation2] sm:$0x1] }
  0x16   :  { %v59_v7 = vmul.f32 -0.5, %v58_v4  ;;  %v60_v8 = vmul.f32 0.5, %v58_v4 }
  0x18   :  { %v61_v10 = vmax.f32 %v59_v7, %v60_v8 }
  0x1a   :  { %v62_v13 = vadd.f32 %v61_v10, %v51_v9 }
  0x1b   :  { %v65_v11 = vld [vmem:[#allocation1 + $0x2] ss:$9 sm:$0xff] }
  0x1c   :  { %v67_v12 = vsub.f32 %v47_v1, %v65_v11 }
  0x1e   :  { %v68_v14 = vmul.f32 -0.1, %v67_v12  ;;  %v69_v15 = vmul.f32 0.9, %v67_v12 }
  0x20   :  { %v70_v16 = vmax.f32 %v68_v14, %v69_v15 }
  0x22   :  { %v71_v17 = vadd.f32 %v70_v16, %v62_v13 }
  0x24   :  { %v74_v18 = vsel %vm73_vm0, %v71_v17, 0.0 }
  0x25   :  { %75 = vadd.xlane.f32.xlu0 %v74_v18 }
  0x98   :  { %v76_v20 = vpop.xlane.xlu0 %75 }
  0x99   :  { %v77_v21 = vrot.slane %v76_v20, 4 }
  0x9b   :  { %v78_v22 = vadd.f32 %v77_v21, %v76_v20 }
  0x9d   :  { %v79_v23 = vrot.slane %v78_v22, 2 }
  0x9f   :  { %v80_v24 = vadd.f32 %v79_v23, %v78_v22 }
  0xa1   :  { %v81_v25 = vrot.slane %v80_v24, 1 }
  0xa3   :  { %v82_v26 = vadd.f32 %v81_v25, %v80_v24 }
  0xa5   :  { %112 = vpush %v82_v26 }
  0xd6   :  { %s113_s0 = spop %112 }
  0xd7   :  { %v84_v28 = vstv %s113_s0 }
  0xd8   :  { %v85_v29 = vadd.f32 %v84_v28, %v72_v27 }
  0xda   :  { %87 = vst.msk [vmem:[#allocation2] sm:$0x1] %vm44_vm1, %v85_v29 }
  0xe1   :  { %v91_v30 = vld [vmem:[#allocation2] sm:$0x1] }
  0xe2   :  { %v92_v31 = vmul.f32 0.125, %v91_v30 }
  0xe4   :  { %93 = vst.msk [vmem:[#allocation8] sm:$0x1] %vm44_vm1, %v92_v31 }
  0xe5   :  { %104 = dma.vmem_to_hbm [thread:$0]  %s100_s19, 16, %s102_s22, [#allocation5]  }
  0xe6   :  { %194 = dma.done.wait [#allocation5], 16  }
  0xe7   :  { %195 = vsyncadd [#allocation5], 4294967280 }
  0xe8   :  { %109 = vsyncpa [#allocation4], 1 }
  0xe9   :  { %110 = vsyncpa [#allocation7], 1 }
  0xea   :  { %111 = vsyncpa [#allocation5], 1 }

</bundles_post_ra>
